<compile_context>
chip_gen: v7x
topology: tpu7x:2x2x1
jax: 0.10.0
libtpu: 0.0.40
codegen_flags: <defaults>
</compile_context>

<pallas_src>
import jax
import jax.numpy as jnp
from jax.experimental import pallas as pl
from jax.experimental.pallas import tpu as pltpu


HL = 50
IN_DIM = 9
ACTOR_OUT = 6
CRITIC_OUT = 1
HEAD_OUT = ACTOR_OUT + CRITIC_OUT   # 7: actor cols 0..5, critic col 6
HIDDEN_PAD = 128                    # lane-dense padded hidden width
HEAD_PAD = 8                        # narrow, sublane-aligned fused-head width
MAX_TILE_B = 512                    # batch-tile cap (near mem-bound sweet spot)


# ----------------------------------------------------------------------------
# Kernel: fused 4-layer MLP, both heads, narrow [TILE_B, 8] output.
# ----------------------------------------------------------------------------
def _ac_fused_kernel(x_ref, w1_ref, w_ref, w3_ref, b_ref, b3_ref, out_ref):
    x = x_ref[...]                                                     # [TB, 9]

    h = jnp.dot(x, w1_ref[...], preferred_element_type=jnp.float32) + b_ref[0:1, :]
    h = jnp.maximum(h, 0.0)                                            # [TB, 128]

    h = jnp.dot(h, w_ref[0], preferred_element_type=jnp.float32) + b_ref[1:2, :]
    h = jnp.maximum(h, 0.0)

    h = jnp.dot(h, w_ref[1], preferred_element_type=jnp.float32) + b_ref[2:3, :]
    h = jnp.maximum(h, 0.0)

    out = jnp.dot(h, w3_ref[...], preferred_element_type=jnp.float32) + b3_ref[...]
    out_ref[...] = out.astype(out_ref.dtype)                           # [TB, 8]


# ----------------------------------------------------------------------------
# One-time parameter packing (hoisted out of the hot path).
# ----------------------------------------------------------------------------
def prepare_params(params):
    """Pack PyTorch-convention params into padded, pre-transposed slabs."""
    w1_p = jnp.zeros((IN_DIM, HIDDEN_PAD), jnp.float32).at[:, :HL].set(params["w1"].T)

    def pad_sq(w_t):
        return jnp.zeros((HIDDEN_PAD, HIDDEN_PAD), jnp.float32).at[:HL, :HL].set(w_t)

    w_slab = jnp.stack([pad_sq(params["w2"].T), pad_sq(params["w2b"].T)])  # [2,128,128]

    w3_fused = jnp.concatenate(
        [params["w3_actor"].T, params["w3_critic"].T], axis=1)            # [50, 7]
    w3_p = jnp.zeros((HIDDEN_PAD, HEAD_PAD), jnp.float32).at[:HL, :HEAD_OUT].set(w3_fused)

    b_slab = jnp.zeros((3, HIDDEN_PAD), jnp.float32)
    b_slab = b_slab.at[0, :HL].set(params["b1"])
    b_slab = b_slab.at[1, :HL].set(params["b2"])
    b_slab = b_slab.at[2, :HL].set(params["b2b"])

    b3 = jnp.zeros((1, HEAD_PAD), jnp.float32)
    b3 = b3.at[0, :ACTOR_OUT].set(params["b3_actor"])
    b3 = b3.at[0, ACTOR_OUT:HEAD_OUT].set(params["b3_critic"])

    return dict(w1=w1_p, w_slab=w_slab, w3=w3_p, b_slab=b_slab, b3=b3)


# ----------------------------------------------------------------------------
# Batch-tile selection: power-of-2 buckets, cap at 512; for B >= 64 pick a tile
# that yields >= 2 "parallel" grid steps (both TensorCores busy on v7x).
# ----------------------------------------------------------------------------
def _choose_tile_b(B):
    if B < 64:
        t = 8
        while t < B:
            t *= 2
        return t                     # single step; per-step overhead dominates
    t = 8
    while t < MAX_TILE_B and t * 2 <= B // 2:
        t *= 2
    return t                         # guarantees >= 2 grid steps


# ----------------------------------------------------------------------------
# Jitted fused forward (returns actor and critic outputs together).
# ----------------------------------------------------------------------------
@jax.jit
def _ac_fused_jit(x, w1, w_slab, w3, b_slab, b3):
    B = x.shape[0]                   # static at trace time
    tile_b = _choose_tile_b(B)
    grid = (pl.cdiv(B, tile_b),)     # ragged last block; no jnp.pad of x

    out = pl.pallas_call(
        _ac_fused_kernel,
        out_shape=jax.ShapeDtypeStruct((B, HEAD_PAD), jnp.float32),
        grid=grid,
        in_specs=[
            pl.BlockSpec((tile_b, IN_DIM), lambda i: (i, 0)),          # x tile (pipelined)
            pl.BlockSpec((IN_DIM, HIDDEN_PAD), lambda i: (0, 0)),      # w1 (resident)
            pl.BlockSpec((2, HIDDEN_PAD, HIDDEN_PAD), lambda i: (0, 0, 0)),  # w2/w2b slab
            pl.BlockSpec((HIDDEN_PAD, HEAD_PAD), lambda i: (0, 0)),    # fused head weight
            pl.BlockSpec((3, HIDDEN_PAD), lambda i: (0, 0)),           # trunk biases
            pl.BlockSpec((1, HEAD_PAD), lambda i: (0, 0)),             # head bias
        ],
        out_specs=pl.BlockSpec((tile_b, HEAD_PAD), lambda i: (i, 0)),
        compiler_params=pltpu.CompilerParams(
            dimension_semantics=("parallel",),   # shard batch across v7x's 2 TCs
        ),
    )(x, w1, w_slab, w3, b_slab, b3)

    actor = out[:, :ACTOR_OUT]
    critic = out[:, ACTOR_OUT:HEAD_OUT]
    return actor, critic


def ac_forward_fused(x, packed):
    """Run the fused AC forward. Returns (actor [B,6], critic [B,1])."""
    return _ac_fused_jit(x, packed["w1"], packed["w_slab"], packed["w3"],
                         packed["b_slab"], packed["b3"])


def ac_forward(x, packed, role):
    """PyTorch-style single-role forward on packed params."""
    actor, critic = ac_forward_fused(x, packed)
    return actor if role == "actor" else critic


# ----------------------------------------------------------------------------
# Init + pure-JAX reference (PyTorch semantics).
# ----------------------------------------------------------------------------
def init_params(key):
    ks = jax.random.split(key, 10)

    def linear_init(kw, kb, fan_in, fan_out):
        bound = 1.0 / jnp.sqrt(fan_in)
        w = jax.random.uniform(kw, (fan_out, fan_in), jnp.float32, -bound, bound)
        b = jax.random.uniform(kb, (fan_out,), jnp.float32, -bound, bound)
        return w, b

    w1, b1 = linear_init(ks[0], ks[1], IN_DIM, HL)
    w2, b2 = linear_init(ks[2], ks[3], HL, HL)
    w2b, b2b = linear_init(ks[4], ks[5], HL, HL)
    # fc3_actor: weight ~ U(-0.05, 0.05), bias = 0 (per module __init__)
    w3_actor = jax.random.uniform(ks[6], (ACTOR_OUT, HL), jnp.float32, -0.05, 0.05)
    b3_actor = jnp.zeros((ACTOR_OUT,), jnp.float32)
    w3_critic, b3_critic = linear_init(ks[7], ks[8], HL, CRITIC_OUT)

    return dict(w1=w1, b1=b1, w2=w2, b2=b2, w2b=w2b, b2b=b2b,
                w3_actor=w3_actor, b3_actor=b3_actor,
                w3_critic=w3_critic, b3_critic=b3_critic)


def ac_forward_ref(x, params, role):
    h = jnp.maximum(x @ params["w1"].T + params["b1"], 0.0)
    h = jnp.maximum(h @ params["w2"].T + params["b2"], 0.0)
    h = jnp.maximum(h @ params["w2b"].T + params["b2b"], 0.0)
    if role == "actor":
        return h @ params["w3_actor"].T + params["b3_actor"]
    return h @ params["w3_critic"].T + params["b3_critic"]


if __name__ == "__main__":
    key = jax.random.PRNGKey(0)
    k_params, k1, k2, k3 = jax.random.split(key, 4)

    params = init_params(k_params)
    packed = prepare_params(params)          # one-time packing, not in hot path

    # batch=2: tiny batch, single partial block
    # batch=13: ragged (non-multiple-of-8) batch, single partial block
    # batch=200: multi-step "parallel" grid with ragged last block
    for batch, kx in ((2, k1), (13, k2), (200, k3)):
        x = jax.random.normal(kx, (batch, IN_DIM), jnp.float32)
        actor_out, critic_out = ac_forward_fused(x, packed)
        actor_out = jax.block_until_ready(actor_out)
        critic_out = jax.block_until_ready(critic_out)

        assert actor_out.shape == (batch, ACTOR_OUT)
        assert critic_out.shape == (batch, CRITIC_OUT)
        assert jnp.allclose(actor_out, ac_forward_ref(x, params, "actor"),
                            atol=1e-4, rtol=1e-4)
        assert jnp.allclose(critic_out, ac_forward_ref(x, params, "critic"),
                            atol=1e-4, rtol=1e-4)

        # Role-selecting wrapper matches PyTorch forward semantics.
        a = jax.block_until_ready(ac_forward(x, packed, "actor"))
        c = jax.block_until_ready(ac_forward(x, packed, "critic"))
        assert jnp.allclose(a, actor_out) and jnp.allclose(c, critic_out)

    print("KERNEL_OK")
</pallas_src>

<mosaic_0001>
module attributes {stable_mosaic.version = 11 : i64} {
  func.func @_ac_fused_kernel(%arg0: i32, %arg1: memref<8x9xf32, #tpu.memory_space<vmem>>, %arg2: memref<9x128xf32, #tpu.memory_space<vmem>>, %arg3: memref<2x128x128xf32, #tpu.memory_space<vmem>>, %arg4: memref<128x8xf32, #tpu.memory_space<vmem>>, %arg5: memref<3x128xf32, #tpu.memory_space<vmem>>, %arg6: memref<1x8xf32, #tpu.memory_space<vmem>>, %arg7: memref<8x8xf32, #tpu.memory_space<vmem>>) attributes {dimension_semantics = [#tpu.dimension_semantics<parallel>], iteration_bounds = array<i64: 1>, scalar_prefetch = 0 : i64, scratch_operands = 0 : i64, tpu.core_type = #tpu.core_type<tc>, window_params = [{transform_indices = @transform_0, window_bounds = array<i64: 8, 9>}, {pipeline_mode = #tpu.pipeline_mode<synchronous>, transform_indices = @transform_1, window_bounds = array<i64: 9, 128>}, {pipeline_mode = #tpu.pipeline_mode<synchronous>, transform_indices = @transform_2, window_bounds = array<i64: 2, 128, 128>}, {pipeline_mode = #tpu.pipeline_mode<synchronous>, transform_indices = @transform_3, window_bounds = array<i64: 128, 8>}, {pipeline_mode = #tpu.pipeline_mode<synchronous>, transform_indices = @transform_4, window_bounds = array<i64: 3, 128>}, {pipeline_mode = #tpu.pipeline_mode<synchronous>, transform_indices = @transform_5, window_bounds = array<i64: 1, 8>}, {transform_indices = @transform_6, window_bounds = array<i64: 8, 8>}]} {
    %c0 = arith.constant 0 : index
    %c0_0 = arith.constant 0 : index
    %0 = vector.load %arg1[%c0, %c0_0] : memref<8x9xf32, #tpu.memory_space<vmem>>, vector<8x9xf32>
    %c0_1 = arith.constant 0 : index
    %c0_2 = arith.constant 0 : index
    %1 = vector.load %arg2[%c0_1, %c0_2] : memref<9x128xf32, #tpu.memory_space<vmem>>, vector<9x128xf32>
    %cst = arith.constant dense<0.000000e+00> : vector<8x128xf32>
    %2 = tpu.matmul %0, %1, %cst {dimension_numbers = #tpu.dot_dimension_numbers<[1], [0], [0], [1], [0, 0, 1, 1], [], []>} : vector<8x9xf32>, vector<9x128xf32>, vector<8x128xf32> -> vector<8x128xf32>
    %c0_3 = arith.constant 0 : index
    %c0_4 = arith.constant 0 : index
    %3 = vector.load %arg5[%c0_3, %c0_4] : memref<3x128xf32, #tpu.memory_space<vmem>>, vector<1x128xf32>
    %4 = vector.broadcast %3 : vector<1x128xf32> to vector<8x128xf32>
    %5 = arith.addf %2, %4 : vector<8x128xf32>
    %cst_5 = arith.constant 0.000000e+00 : f32
    %6 = vector.broadcast %cst_5 : f32 to vector<8x128xf32>
    %7 = arith.maximumf %5, %6 : vector<8x128xf32>
    %c0_6 = arith.constant 0 : index
    %c0_7 = arith.constant 0 : index
    %c0_8 = arith.constant 0 : index
    %8 = vector.load %arg3[%c0_6, %c0_7, %c0_8] : memref<2x128x128xf32, #tpu.memory_space<vmem>>, vector<1x128x128xf32>
    %9 = vector.shape_cast %8 : vector<1x128x128xf32> to vector<128x128xf32>
    %cst_9 = arith.constant dense<0.000000e+00> : vector<8x128xf32>
    %10 = tpu.matmul %7, %9, %cst_9 {dimension_numbers = #tpu.dot_dimension_numbers<[1], [0], [0], [1], [0, 0, 1, 1], [], []>} : vector<8x128xf32>, vector<128x128xf32>, vector<8x128xf32> -> vector<8x128xf32>
    %c1 = arith.constant 1 : index
    %c0_10 = arith.constant 0 : index
    %11 = vector.load %arg5[%c1, %c0_10] : memref<3x128xf32, #tpu.memory_space<vmem>>, vector<1x128xf32>
    %12 = vector.broadcast %11 : vector<1x128xf32> to vector<8x128xf32>
    %13 = arith.addf %10, %12 : vector<8x128xf32>
    %cst_11 = arith.constant 0.000000e+00 : f32
    %14 = vector.broadcast %cst_11 : f32 to vector<8x128xf32>
    %15 = arith.maximumf %13, %14 : vector<8x128xf32>
    %c1_12 = arith.constant 1 : index
    %c0_13 = arith.constant 0 : index
    %c0_14 = arith.constant 0 : index
    %16 = vector.load %arg3[%c1_12, %c0_13, %c0_14] : memref<2x128x128xf32, #tpu.memory_space<vmem>>, vector<1x128x128xf32>
    %17 = vector.shape_cast %16 : vector<1x128x128xf32> to vector<128x128xf32>
    %cst_15 = arith.constant dense<0.000000e+00> : vector<8x128xf32>
    %18 = tpu.matmul %15, %17, %cst_15 {dimension_numbers = #tpu.dot_dimension_numbers<[1], [0], [0], [1], [0, 0, 1, 1], [], []>} : vector<8x128xf32>, vector<128x128xf32>, vector<8x128xf32> -> vector<8x128xf32>
    %c2 = arith.constant 2 : index
    %c0_16 = arith.constant 0 : index
    %19 = vector.load %arg5[%c2, %c0_16] : memref<3x128xf32, #tpu.memory_space<vmem>>, vector<1x128xf32>
    %20 = vector.broadcast %19 : vector<1x128xf32> to vector<8x128xf32>
    %21 = arith.addf %18, %20 : vector<8x128xf32>
    %cst_17 = arith.constant 0.000000e+00 : f32
    %22 = vector.broadcast %cst_17 : f32 to vector<8x128xf32>
    %23 = arith.maximumf %21, %22 : vector<8x128xf32>
    %c0_18 = arith.constant 0 : index
    %c0_19 = arith.constant 0 : index
    %24 = vector.load %arg4[%c0_18, %c0_19] : memref<128x8xf32, #tpu.memory_space<vmem>>, vector<128x8xf32>
    %cst_20 = arith.constant dense<0.000000e+00> : vector<8x8xf32>
    %25 = tpu.matmul %23, %24, %cst_20 {dimension_numbers = #tpu.dot_dimension_numbers<[1], [0], [0], [1], [0, 0, 1, 1], [], []>} : vector<8x128xf32>, vector<128x8xf32>, vector<8x8xf32> -> vector<8x8xf32>
    %c0_21 = arith.constant 0 : index
    %c0_22 = arith.constant 0 : index
    %26 = vector.load %arg6[%c0_21, %c0_22] : memref<1x8xf32, #tpu.memory_space<vmem>>, vector<1x8xf32>
    %27 = vector.broadcast %26 : vector<1x8xf32> to vector<8x8xf32>
    %28 = arith.addf %25, %27 : vector<8x8xf32>
    %c0_23 = arith.constant 0 : index
    %c0_24 = arith.constant 0 : index
    %29 = vector.load %arg7[%c0_23, %c0_24] : memref<8x8xf32, #tpu.memory_space<vmem>>, vector<8x8xf32>
    tpu.vector_store %arg7[%c0_23, %c0_24], %28 {strides = array<i32>} : memref<8x8xf32, #tpu.memory_space<vmem>>, vector<8x8xf32>,
    return
  }
  func.func @transform_0(%arg0: i32) -> (i32, i32) {
    %c0_i32 = arith.constant 0 : i32
    %c0_i32_0 = arith.constant 0 : i32
    return %arg0, %c0_i32 : i32, i32
  }
  func.func @transform_1(%arg0: i32) -> (i32, i32) {
    %c0_i32 = arith.constant 0 : i32
    %c0_i32_0 = arith.constant 0 : i32
    %c0_i32_1 = arith.constant 0 : i32
    return %c0_i32, %c0_i32_0 : i32, i32
  }
  func.func @transform_2(%arg0: i32) -> (i32, i32, i32) {
    %c0_i32 = arith.constant 0 : i32
    %c0_i32_0 = arith.constant 0 : i32
    %c0_i32_1 = arith.constant 0 : i32
    %c0_i32_2 = arith.constant 0 : i32
    return %c0_i32, %c0_i32_0, %c0_i32_1 : i32, i32, i32
  }
  func.func @transform_3(%arg0: i32) -> (i32, i32) {
    %c0_i32 = arith.constant 0 : i32
    %c0_i32_0 = arith.constant 0 : i32
    %c0_i32_1 = arith.constant 0 : i32
    return %c0_i32, %c0_i32_0 : i32, i32
  }
  func.func @transform_4(%arg0: i32) -> (i32, i32) {
    %c0_i32 = arith.constant 0 : i32
    %c0_i32_0 = arith.constant 0 : i32
    %c0_i32_1 = arith.constant 0 : i32
    return %c0_i32, %c0_i32_0 : i32, i32
  }
  func.func @transform_5(%arg0: i32) -> (i32, i32) {
    %c0_i32 = arith.constant 0 : i32
    %c0_i32_0 = arith.constant 0 : i32
    %c0_i32_1 = arith.constant 0 : i32
    return %c0_i32, %c0_i32_0 : i32, i32
  }
  func.func @transform_6(%arg0: i32) -> (i32, i32) {
    %c0_i32 = arith.constant 0 : i32
    %c0_i32_0 = arith.constant 0 : i32
    return %arg0, %c0_i32 : i32, i32
  }
}

</mosaic_0001>

<bundles_post_ra>
// kernel: _ac_fused_jit.1
= control target key start
LH: loop header
LB: loop body
LE: loop exit
PB: predicated region body
PF: predicated region fallthrough
CT: control target
= control target key end

     0   :  { %11 = vsyncpa [#allocation3], 0  ;;  %s723_s21 = smov [#allocation2]   ;;  %s882_s0 = inlined_call_operand.vmem [shape: f32[2,9], index: 0, kind: input, shape index: {}]   ;;  %s883_s1 = inlined_call_operand.vmem [shape: f32[9,128], index: 1, kind: input, shape index: {}]   ;;  %s884_s2 = inlined_call_operand.hbm [shape: f32[2,128,128], index: 2, kind: input, shape index: {}]   ;;  %s885_s3 = inlined_call_operand.vmem [shape: f32[128,8], index: 3, kind: input, shape index: {}]   ;;  %s886_s4 = inlined_call_operand.vmem [shape: f32[3,128], index: 4, kind: input, shape index: {}]   ;;  %s887_s5 = inlined_call_operand.vmem [shape: f32[1,8], index: 5, kind: input, shape index: {}]   ;;  %s888_s6 = inlined_call_operand.vmem [shape: f32[2,8], index: 6, kind: output, shape index: {}]  }
   0x1   :  { %s21_s22 = sshll.u32 %s723_s21, 4  ;;  %s699_s25 = scalar_lea.hbm %s884_s2, 4096  ;;  %s22_s22 = int_to_ptr.vmem [resolvable:$true] %s21_s22 }
   0x2   :  { %p700_p0 = scmp.ne.s32.totalorder %s884_s2, %s699_s25  ;;  %p703_p1 = scmp.lt.u32.totalorder %s699_s25, %s884_s2 }
   0x4   :  { %p705_p2 = pnand %p703_p1, %p700_p0 }
   0x6   :  { %708 = shalt.err (!%p705_p2)
}
   0x7   :  { %s709_s30 = scalar_lea.vmem %s22_s22, 4096  ;;  %p714_p4 = scmp.lt.s32.totalorder %s22_s22, %s22_s22 }
   0x8   :  { %p710_p3 = scmp.ne.s32.totalorder %s22_s22, %s709_s30  ;;  %p715_p5 = scmp.lt.s32.totalorder %s709_s30, %s709_s30 }
   0xa   :  { %p716_p6 = por %p715_p5, %p714_p4 }
   0xc   :  { %p717_p7 = pnand %p716_p6, %p710_p3 }
   0xe   :  { %720 = shalt.err (!%p717_p7)
}
   0xf   :  { %s724_s7 = smov 128   ;;  %s725_s8 = smov 8  }
  0x10   :  { %27 = dma.hbm_to_vmem [thread:$0]  %s884_s2, 4096, %s22_s22, [#allocation3], %s724_s7, %s724_s7, %s725_s8  }
  0x11   :  { %721 = dma.done.wait [#allocation3], 4096  }
  0x12   :  { %722 = vsyncadd [#allocation3], 4294963200  ;;  %v726_v0 = vmov 0.0|0.0   ;;  %vm727_vm0 = vmmov 0   ;;  %v728_v1 = vmov 0.0   ;;  %vm49_vm1 = vcmask 1040384  }
  0x13   :  { %616 = vmatprep.subr.bf16.mxu0 %v726_v0  ;;  %620 = vmatprep.subr.bf16.mxu1 %v726_v0  ;;  %v38_v2 = vld [vmem:[%s883_s1] sm:$0xff]  ;;  %v39_v3 = vld [vmem:[%s883_s1 + $0x8] sm:$0x1]  ;;  %vm729_vm2 = vmmov 1   ;;  %v126_v7 = vld [vmem:[#allocation2 + $0x10] sm:$0xff]  ;;  %vm45_vm4 = vcmask 72704  }
  0x14   :  { %508 = vmatprep.mubr.msk.f32.mxu0 %vm727_vm0, %v728_v1  ;;  %543 = vmatprep.mubr.msk.f32.mxu1 %vm727_vm0, %v728_v1  ;;  %vm618_vm3 = vmpackc.low %vm49_vm1, %vm729_vm2  ;;  %v617_v4 = vpack.c.bf16 %v39_v3, %v38_v2  ;;  %v124_v5 = vld [vmem:[#allocation2] sm:$0xff]  ;;  %v125_v6 = vld [vmem:[#allocation2 + $0x8] sm:$0xff]  ;;  %vm402_vm5 = vcmask 64512  }
  0x15   :  { %v621_v8 = vpack.c.bf16 %v125_v6, %v124_v5  ;;  %v127_v9 = vld [vmem:[#allocation2 + $0x18] sm:$0xff]  ;;  %v37_v10 = vld [vmem:[%s882_s0] sm:$0xff]  ;;  %v129_v13 = vld [vmem:[#allocation2 + $0x28] sm:$0xff] }
  0x16   :  { %619 = vmatpush3.bf16.msk.msra.mxu0 %vm618_vm3, %v617_v4  ;;  %v624_v11 = vpack.c.bf16 %v127_v9, %v126_v7  ;;  %v128_v12 = vld [vmem:[#allocation2 + $0x20] sm:$0xff]  ;;  %v130_v15 = vld [vmem:[#allocation2 + $0x30] sm:$0xff]  ;;  %v131_v16 = vld [vmem:[#allocation2 + $0x38] sm:$0xff] }
  0x17   :  { %622 = vmatpush3.bf16.msra.mxu1 %v621_v8  ;;  %644 = vmatprep.subr.bf16.mxu0 %v726_v0  ;;  %v627_v14 = vpack.c.bf16 %v129_v13, %v128_v12  ;;  %v630_v17 = vpack.c.bf16 %v131_v16, %v130_v15  ;;  %v132_v18 = vld [vmem:[#allocation2 + $0x40] sm:$0xff]  ;;  %v133_v19 = vld [vmem:[#allocation2 + $0x48] sm:$0xff]  ;;  %v134_v21 = vld [vmem:[#allocation2 + $0x50] sm:$0xff] }
  0x18   :  { %623 = vmatprep.subr.bf16.mxu1 %v726_v0  ;;  %v633_v20 = vpack.c.bf16 %v133_v19, %v132_v18  ;;  %v135_v22 = vld [vmem:[#allocation2 + $0x58] sm:$0xff]  ;;  %v136_v24 = vld [vmem:[#allocation2 + $0x60] sm:$0xff]  ;;  %v137_v25 = vld [vmem:[#allocation2 + $0x68] sm:$0xff] }
  0x19   :  { %509 = vmatmul.mubr.msk.f32.vlgmr.msra.gmra.mrb[0].mxu0 %vm45_vm4, %v37_v10  ;;  %v636_v23 = vpack.c.bf16 %v135_v22, %v134_v21  ;;  %v639_v26 = vpack.c.bf16 %v137_v25, %v136_v24  ;;  %v138_v27 = vld [vmem:[#allocation2 + $0x70] sm:$0xff]  ;;  %v139_v28 = vld [vmem:[#allocation2 + $0x78] sm:$0xff]  ;;  %v217_v30 = vld [vmem:[#allocation2 + $0x80] sm:$0xff] }
  0x1a   :  { %578 = vmatprep.mubr.msk.f32.mxu0 %vm727_vm0, %v728_v1  ;;  %v642_v29 = vpack.c.bf16 %v139_v28, %v138_v27  ;;  %v218_v31 = vld [vmem:[#allocation2 + $0x88] sm:$0xff]  ;;  %v219_v32 = vld [vmem:[#allocation2 + $0x90] sm:$0xff]  ;;  %v220_v34 = vld [vmem:[#allocation2 + $0x98] sm:$0xff] }
  0x1b   :  { %625 = vmatpush3.bf16.msra.mxu1 %v624_v11  ;;  %v645_v33 = vpack.c.bf16 %v218_v31, %v217_v30  ;;  %v648_v35 = vpack.c.bf16 %v220_v34, %v219_v32  ;;  %v221_v36 = vld [vmem:[#allocation2 + $0xa0] sm:$0xff]  ;;  %v222_v37 = vld [vmem:[#allocation2 + $0xa8] sm:$0xff]  ;;  %v223_v39 = vld [vmem:[#allocation2 + $0xb0] sm:$0xff] }
  0x1c   :  { %626 = vmatprep.subr.bf16.mxu1 %v726_v0  ;;  %v651_v38 = vpack.c.bf16 %v222_v37, %v221_v36  ;;  %v224_v40 = vld [vmem:[#allocation2 + $0xb8] sm:$0xff]  ;;  %v225_v42 = vld [vmem:[#allocation2 + $0xc0] sm:$0xff]  ;;  %v226_v43 = vld [vmem:[#allocation2 + $0xc8] sm:$0xff] }
  0x1d   :  { %646 = vmatpush3.bf16.msra.mxu0 %v645_v33  ;;  %v654_v41 = vpack.c.bf16 %v224_v40, %v223_v39  ;;  %v657_v44 = vpack.c.bf16 %v226_v43, %v225_v42  ;;  %v227_v45 = vld [vmem:[#allocation2 + $0xd0] sm:$0xff]  ;;  %v228_v46 = vld [vmem:[#allocation2 + $0xd8] sm:$0xff]  ;;  %v229_v48 = vld [vmem:[#allocation2 + $0xe0] sm:$0xff] }
  0x1e   :  { %647 = vmatprep.subr.bf16.mxu0 %v726_v0  ;;  %v660_v47 = vpack.c.bf16 %v228_v46, %v227_v45  ;;  %v230_v49 = vld [vmem:[#allocation2 + $0xe8] sm:$0xff]  ;;  %v444_v51 = vld [vmem:[%s886_s4] ss:$0 sm:$0xff]  ;;  %v231_v56 = vld [vmem:[#allocation2 + $0xf0] sm:$0xff] }
  0x1f   :  { %628 = vmatpush3.bf16.msra.mxu1 %v627_v14  ;;  %v663_v50 = vpack.c.bf16 %v230_v49, %v229_v48  ;;  %v232_v57 = vld [vmem:[#allocation2 + $0xf8] sm:$0xff]  ;;  %v309_v59 = vld [vmem:[%s885_s3] sm:$0xff]  ;;  %v310_v60 = vld [vmem:[%s885_s3 + $0x8] sm:$0xff] }
  0x20   :  { %629 = vmatprep.subr.bf16.mxu1 %v726_v0  ;;  %v666_v58 = vpack.c.bf16 %v232_v57, %v231_v56  ;;  %v311_v61 = vld [vmem:[%s885_s3 + $0x10] sm:$0xff]  ;;  %v669_v62 = vpack.c.bf16 %v310_v60, %v309_v59  ;;  %v312_v63 = vld [vmem:[%s885_s3 + $0x18] sm:$0xff]  ;;  %v313_v2 = vld [vmem:[%s885_s3 + $0x20] sm:$0xff] }
  0x21   :  { %649 = vmatpush3.bf16.msra.mxu0 %v648_v35  ;;  %v314_v3 = vld [vmem:[%s885_s3 + $0x28] sm:$0xff]  ;;  %v315_v5 = vld [vmem:[%s885_s3 + $0x30] sm:$0xff]  ;;  %v316_v6 = vld [vmem:[%s885_s3 + $0x38] sm:$0xff] }
  0x22   :  { %650 = vmatprep.subr.bf16.mxu0 %v726_v0  ;;  %v675_v4 = vpack.c.bf16 %v314_v3, %v313_v2  ;;  %v678_v7 = vpack.c.bf16 %v316_v6, %v315_v5  ;;  %v317_v8 = vld [vmem:[%s885_s3 + $0x40] sm:$0xff]  ;;  %v318_v9 = vld [vmem:[%s885_s3 + $0x48] sm:$0xff]  ;;  %v319_v11 = vld [vmem:[%s885_s3 + $0x50] sm:$0xff] }
  0x23   :  { %631 = vmatpush3.bf16.msra.mxu1 %v630_v17  ;;  %v681_v10 = vpack.c.bf16 %v318_v9, %v317_v8  ;;  %v320_v12 = vld [vmem:[%s885_s3 + $0x58] sm:$0xff]  ;;  %v321_v14 = vld [vmem:[%s885_s3 + $0x60] sm:$0xff]  ;;  %v322_v15 = vld [vmem:[%s885_s3 + $0x68] sm:$0xff] }
  0x24   :  { %632 = vmatprep.subr.bf16.mxu1 %v726_v0  ;;  %v684_v13 = vpack.c.bf16 %v320_v12, %v319_v11  ;;  %v687_v16 = vpack.c.bf16 %v322_v15, %v321_v14  ;;  %v447_v17 = vld [vmem:[%s886_s4 + $0x1] ss:$0 sm:$0xff]  ;;  %v323_v22 = vld [vmem:[%s885_s3 + $0x70] sm:$0xff] }
  0x25   :  { %652 = vmatpush3.bf16.msra.mxu0 %v651_v38 }
  0x26   :  { %653 = vmatprep.subr.bf16.mxu0 %v726_v0 }
  0x27   :  { %634 = vmatpush3.bf16.msra.mxu1 %v633_v20 }
  0x28   :  { %635 = vmatprep.subr.bf16.mxu1 %v726_v0 }
  0x29   :  { %655 = vmatpush3.bf16.msra.mxu0 %v654_v41 }
  0x2a   :  { %656 = vmatprep.subr.bf16.mxu0 %v726_v0 }
  0x2b   :  { %637 = vmatpush3.bf16.msra.mxu1 %v636_v23  ;;  %v324_v23 = vld [vmem:[%s885_s3 + $0x78] sm:$0xff] }
  0x2c   :  { %638 = vmatprep.subr.bf16.mxu1 %v726_v0  ;;  %v690_v24 = vpack.c.bf16 %v324_v23, %v323_v22 }
  0x2d   :  { %658 = vmatpush3.bf16.msra.mxu0 %v657_v44 }
  0x2e   :  { %659 = vmatprep.subr.bf16.mxu0 %v726_v0 }
  0x2f   :  { %640 = vmatpush3.bf16.msra.mxu1 %v639_v26 }
  0x30   :  { %641 = vmatprep.subr.bf16.mxu1 %v726_v0 }
  0x31   :  { %661 = vmatpush3.bf16.msra.mxu0 %v660_v47 }
  0x32   :  { %662 = vmatprep.subr.bf16.mxu0 %v726_v0 }
  0x33   :  { %643 = vmatpush3.bf16.msra.mxu1 %v642_v29  ;;  %v449_v29 = vld [vmem:[%s887_s5] ss:$0 sm:$0xff] }
  0x34   :  { %668 = vmatprep.subr.bf16.mxu1 %v726_v0 }
  0x35   :  { %664 = vmatpush3.bf16.msra.mxu0 %v663_v50 }
  0x36   :  { %665 = vmatprep.subr.bf16.mxu0 %v726_v0 }
  0x39   :  { %667 = vmatpush3.bf16.msra.mxu0 %v666_v58 }
  0xec   :  { %v119_v52 = vpop.f32.mrb[0].mxu0 }
  0xed   :  { %v120_v53 = vadd.f32 %v444_v51, %v119_v52  ;;  %v510_v54 = vpop.f32.mrb[1].mxu0 }
  0xef   :  { %v123_v55 = vmax.f32 %v120_v53, 0.0 }
  0xf1   :  { %544 = vmatmul.mubr.f32.vlgmr.msra.gmra.mrb[0].mxu1 %v123_v55 }
  0xf2   :  { %613 = vmatprep.mubr.msk.f32.mxu1 %vm727_vm0, %v728_v1  ;;  %670 = vmatpush3.bf16.msra.mxu1 %v669_v62  ;;  %v672_v1 = vpack.c.bf16 %v312_v63, %v311_v61 }
  0xf3   :  { %671 = vmatprep.subr.bf16.mxu1 %v726_v0 }
  0xf6   :  { %673 = vmatpush3.bf16.msra.mxu1 %v672_v1 }
  0xf7   :  { %674 = vmatprep.subr.bf16.mxu1 %v726_v0 }
  0xfa   :  { %676 = vmatpush3.bf16.msra.mxu1 %v675_v4 }
  0xfb   :  { %677 = vmatprep.subr.bf16.mxu1 %v726_v0 }
  0xfe   :  { %679 = vmatpush3.bf16.msra.mxu1 %v678_v7 }
  0xff   :  { %680 = vmatprep.subr.bf16.mxu1 %v726_v0 }
 0x102   :  { %682 = vmatpush3.bf16.msra.mxu1 %v681_v10 }
 0x103   :  { %683 = vmatprep.subr.bf16.mxu1 %v726_v0 }
 0x106   :  { %685 = vmatpush3.bf16.msra.mxu1 %v684_v13 }
 0x107   :  { %686 = vmatprep.subr.bf16.mxu1 %v726_v0 }
 0x10a   :  { %688 = vmatpush3.bf16.msra.mxu1 %v687_v16 }
 0x10b   :  { %689 = vmatprep.subr.bf16.mxu1 %v726_v0  ;;  %v448_v0 = vld [vmem:[%s886_s4 + $0x2] ss:$0 sm:$0xff] }
 0x10e   :  { %691 = vmatpush3.bf16.msra.mxu1 %v690_v24 }
 0x1c4   :  { %v211_v18 = vpop.f32.mrb[0].mxu1 }
 0x1c5   :  { %v212_v19 = vadd.f32 %v447_v17, %v211_v18  ;;  %v545_v20 = vpop.f32.mrb[1].mxu1 }
 0x1c7   :  { %v215_v21 = vmax.f32 %v212_v19, 0.0 }
 0x1c9   :  { %579 = vmatmul.mubr.f32.vlgmr.msra.gmra.mrb[2].mxu0 %v215_v21 }
 0x29c   :  { %v304_v25 = vpop.f32.mrb[2].mxu0 }
 0x29d   :  { %v305_v26 = vadd.f32 %v448_v0, %v304_v25  ;;  %v580_v27 = vpop.f32.mrb[3].mxu0 }
 0x29f   :  { %v308_v28 = vmax.f32 %v305_v26, 0.0 }
 0x2a1   :  { %614 = vmatmul.mubr.f32.vlgmr.msra.gmra.mrb[2].mxu1 %v308_v28 }
 0x374   :  { %v398_v30 = vpop.f32.mrb[2].mxu1 }
 0x375   :  { %v399_v31 = vadd.f32 %v449_v29, %v398_v30  ;;  %v615_v32 = vpop.f32.mrb[3].mxu1 }
 0x377   :  { %403 = vst.msk [vmem:[#allocation4] sm:$0xff] %vm402_vm5, %v399_v31 }
 0x37e   :  { %v421_v33 = vld [vmem:[#allocation4] sm:$0x3] }
 0x37f   :  { %422 = vst [vmem:[%s888_s6] sm:$0x3] %v421_v33 }
 0x380   :  { %439 = vsyncpa [#allocation3], 1 }

</bundles_post_ra>
